<compile_context>
chip_gen: v7x
topology: tpu7x:2x2x1
jax: 0.10.0
libtpu: 0.0.40
codegen_flags: <defaults>
</compile_context>

<pallas_src>
import functools

import jax
import jax.numpy as jnp
from jax.experimental import pallas as pl
from jax.experimental.pallas import tpu as pltpu


def noise_shaper_kernel(feat_ref, noise_ref, w1_ref, b1_ref, w2_ref, b2_ref,
                        out_ref, *, frames_per_batch):
    # feat_ref : (R, D)   flattened (batch*frames, feature_dim) rows
    # noise_ref: (R, F)   standard normal noise
    # w1_ref   : (2D, F)  conv1 taps [tap0 (t-1); tap1 (t)] stacked on K
    # w2_ref   : (2F, F)  conv2 taps stacked on K
    # b1/b2    : (1, F)
    x = feat_ref[...].astype(jnp.float32)                       # (R, D)
    rows = x.shape[0]

    # Frame-start mask, computed once and reused for both causal shifts.
    row_idx = jax.lax.broadcasted_iota(jnp.int32, (rows, 1), 0)
    frame_start = (row_idx % frames_per_batch) == 0             # (R, 1)

    # Causal shift along the (sublane) row axis: row t <- row t-1, and zero
    # at every batch's first frame (left zero-pad of the causal conv).
    x_prev = jnp.where(frame_start, 0.0, pltpu.roll(x, shift=1, axis=0))

    # Conv1d(feature_dim -> frame_size, k=2) as ONE matmul (K = 2*D),
    # then leaky_relu(0.2).
    xcat = jnp.concatenate([x_prev, x], axis=-1)                 # (R, 2D)
    h = (jnp.dot(xcat, w1_ref[...], preferred_element_type=jnp.float32)
         + b1_ref[...])                                          # (R, F)
    h = jnp.where(h >= 0, h, 0.2 * h)

    # Conv1d(frame_size -> frame_size, k=2) as ONE matmul (K = 2*F), then exp.
    h_prev = jnp.where(frame_start, 0.0, pltpu.roll(h, shift=1, axis=0))
    hcat = jnp.concatenate([h_prev, h], axis=-1)                 # (R, 2F)
    alpha = jnp.exp(
        jnp.dot(hcat, w2_ref[...], preferred_element_type=jnp.float32)
        + b2_ref[...])                                           # (R, F)

    out_ref[...] = (alpha * noise_ref[...].astype(jnp.float32)).astype(out_ref.dtype)


def noise_shaper_forward(features, noise, w1, b1, w2, b2,
                         max_rows_per_tile=2048):
    """features: (B, N, D); noise: (B, N, F); w1: (F, D, 2); w2: (F, F, 2).

    Returns (B, 1, N*F), matching y.reshape(batch_size, 1, num_samples).
    """
    B, N, D = features.shape
    Fsz = w1.shape[0]
    R = B * N

    # Conv weights -> fused matmul form (right-multiply):
    # (out, in, tap) -> stack taps along K: (2*in, out).
    w1cat = jnp.concatenate(
        [jnp.transpose(w1[:, :, 0]), jnp.transpose(w1[:, :, 1])],
        axis=0).astype(jnp.float32)                              # (2D, F)
    w2cat = jnp.concatenate(
        [jnp.transpose(w2[:, :, 0]), jnp.transpose(w2[:, :, 1])],
        axis=0).astype(jnp.float32)                              # (2F, F)
    b1_2d = b1.reshape(1, Fsz).astype(jnp.float32)
    b2_2d = b2.reshape(1, Fsz).astype(jnp.float32)

    # Flatten (B, N) into one row axis — bigger, lane/sublane-dense tiles.
    feat_flat = features.reshape(R, D)
    noise_flat = noise.reshape(R, Fsz)

    # Pick how many whole batches go into one row tile.  Default: everything
    # in a single tile (block == full array, no alignment constraint).  Only
    # split when the problem is large, keeping tiles as whole batches and
    # sublane-aligned so the in-kernel causal mask stays correct.
    batches_per_tile = B
    if R > max_rows_per_tile:
        for d in range(B, 0, -1):
            if B % d == 0 and d * N <= max_rows_per_tile and (d * N) % 8 == 0:
                batches_per_tile = d
                break
    rows_per_tile = batches_per_tile * N
    grid = (B // batches_per_tile,)

    kernel = functools.partial(noise_shaper_kernel, frames_per_batch=N)

    out = pl.pallas_call(
        kernel,
        out_shape=jax.ShapeDtypeStruct((R, Fsz), features.dtype),
        grid_spec=pltpu.PrefetchScalarGridSpec(
            num_scalar_prefetch=0,
            grid=grid,
            in_specs=[
                pl.BlockSpec((rows_per_tile, D), lambda i: (i, 0)),     # features
                pl.BlockSpec((rows_per_tile, Fsz), lambda i: (i, 0)),   # noise
                pl.BlockSpec((2 * D, Fsz), lambda i: (0, 0)),           # w1 (fused taps)
                pl.BlockSpec((1, Fsz), lambda i: (0, 0)),               # b1
                pl.BlockSpec((2 * Fsz, Fsz), lambda i: (0, 0)),         # w2 (fused taps)
                pl.BlockSpec((1, Fsz), lambda i: (0, 0)),               # b2
            ],
            out_specs=pl.BlockSpec((rows_per_tile, Fsz), lambda i: (i, 0)),
        ),
        compiler_params=pltpu.CompilerParams(
            dimension_semantics=("parallel",)),
    )(feat_flat, noise_flat, w1cat, b1_2d, w2cat, b2_2d)

    # (B*N, F) -> (B, 1, N*F), matching y.reshape(batch_size, 1, num_samples)
    return out.reshape(B, 1, N * Fsz)


def noise_shaper_reference(features, noise, w1, b1, w2, b2):
    """Pure-JAX reference of the PyTorch forward (for correctness check)."""
    B, N, D = features.shape
    Fsz = w1.shape[0]
    x_prev = jnp.pad(features, ((0, 0), (1, 0), (0, 0)))[:, :-1, :]
    h = (jnp.einsum('bnd,fd->bnf', x_prev, w1[:, :, 0])
         + jnp.einsum('bnd,fd->bnf', features, w1[:, :, 1]) + b1)
    h = jnp.where(h >= 0, h, 0.2 * h)
    h_prev = jnp.pad(h, ((0, 0), (1, 0), (0, 0)))[:, :-1, :]
    a = jnp.exp(jnp.einsum('bnf,gf->bng', h_prev, w2[:, :, 0])
                + jnp.einsum('bnf,gf->bng', h, w2[:, :, 1]) + b2)
    return (a * noise).reshape(B, 1, N * Fsz)


if __name__ == "__main__":
    # Small, module-consistent shapes:
    B, N, D, FRAME = 2, 8, 32, 128   # batch, num_frames, feature_dim, frame_size

    key = jax.random.PRNGKey(0)
    k_feat, k_noise, k_w1, k_b1, k_w2, k_b2 = jax.random.split(key, 6)

    features = jax.random.normal(k_feat, (B, N, D), dtype=jnp.float32)
    # torch.randn((B, N, frame_size)) equivalent, deterministic:
    noise = jax.random.normal(k_noise, (B, N, FRAME), dtype=jnp.float32)

    # Deterministic synthetic Conv1d params (Conv1d(out, in, kernel=2)).
    w1 = 0.05 * jax.random.normal(k_w1, (FRAME, D, 2), dtype=jnp.float32)
    b1 = 0.05 * jax.random.normal(k_b1, (FRAME,), dtype=jnp.float32)
    w2 = 0.05 * jax.random.normal(k_w2, (FRAME, FRAME, 2), dtype=jnp.float32)
    b2 = 0.05 * jax.random.normal(k_b2, (FRAME,), dtype=jnp.float32)

    out = noise_shaper_forward(features, noise, w1, b1, w2, b2)
    out = jax.block_until_ready(out)

    ref = noise_shaper_reference(features, noise, w1, b1, w2, b2)
    assert out.shape == (B, 1, N * FRAME), out.shape
    assert jnp.allclose(out, ref, rtol=1e-4, atol=1e-5), \
        f"max abs err {jnp.max(jnp.abs(out - ref))}"

    print("KERNEL_OK")
</pallas_src>

<mosaic_0001>
module attributes {stable_mosaic.version = 11 : i64} {
  func.func @noise_shaper_kernel(%arg0: i32, %arg1: memref<16x32xf32, #tpu.memory_space<vmem>>, %arg2: memref<16x128xf32, #tpu.memory_space<vmem>>, %arg3: memref<64x128xf32, #tpu.memory_space<vmem>>, %arg4: memref<1x128xf32, #tpu.memory_space<vmem>>, %arg5: memref<256x128xf32, #tpu.memory_space<vmem>>, %arg6: memref<1x128xf32, #tpu.memory_space<vmem>>, %arg7: memref<16x128xf32, #tpu.memory_space<vmem>>) attributes {dimension_semantics = [#tpu.dimension_semantics<parallel>], iteration_bounds = array<i64: 1>, scalar_prefetch = 0 : i64, scratch_operands = 0 : i64, tpu.core_type = #tpu.core_type<tc>, window_params = [{transform_indices = @transform_0, window_bounds = array<i64: 16, 32>}, {transform_indices = @transform_1, window_bounds = array<i64: 16, 128>}, {pipeline_mode = #tpu.pipeline_mode<synchronous>, transform_indices = @transform_2, window_bounds = array<i64: 64, 128>}, {pipeline_mode = #tpu.pipeline_mode<synchronous>, transform_indices = @transform_3, window_bounds = array<i64: 1, 128>}, {pipeline_mode = #tpu.pipeline_mode<synchronous>, transform_indices = @transform_4, window_bounds = array<i64: 256, 128>}, {pipeline_mode = #tpu.pipeline_mode<synchronous>, transform_indices = @transform_5, window_bounds = array<i64: 1, 128>}, {transform_indices = @transform_6, window_bounds = array<i64: 16, 128>}]} {
    %c0 = arith.constant 0 : index
    %c0_0 = arith.constant 0 : index
    %0 = vector.load %arg1[%c0, %c0_0] : memref<16x32xf32, #tpu.memory_space<vmem>>, vector<16x32xf32>
    %1 = tpu.iota {dimensions = array<i32: 0>} : vector<16x1xi32>
    %c8_i32 = arith.constant 8 : i32
    %c0_i32 = arith.constant 0 : i32
    %2 = arith.cmpi eq, %c8_i32, %c0_i32 : i32
    %c1_i32 = arith.constant 1 : i32
    %3 = arith.select %2, %c1_i32, %c8_i32 : i32
    %4 = vector.broadcast %3 : i32 to vector<16x1xi32>
    %5 = arith.remsi %1, %4 : vector<16x1xi32>
    %c0_i32_1 = arith.constant 0 : i32
    %6 = vector.broadcast %c0_i32_1 : i32 to vector<16x1xi32>
    %7 = arith.cmpi ne, %5, %6 : vector<16x1xi32>
    %c0_i32_2 = arith.constant 0 : i32
    %8 = vector.broadcast %c0_i32_2 : i32 to vector<16x1xi32>
    %9 = arith.cmpi slt, %5, %8 : vector<16x1xi32>
    %c0_i32_3 = arith.constant 0 : i32
    %10 = arith.cmpi slt, %3, %c0_i32_3 : i32
    %11 = vector.broadcast %10 : i1 to vector<16x1xi1>
    %12 = vector.broadcast %11 : vector<16x1xi1> to vector<16x1xi1>
    %13 = arith.xori %9, %12 : vector<16x1xi1>
    %14 = arith.andi %13, %7 : vector<16x1xi1>
    %15 = vector.broadcast %3 : i32 to vector<16x1xi32>
    %16 = arith.addi %5, %15 : vector<16x1xi32>
    %17 = arith.select %14, %16, %5 : vector<16x1xi1>, vector<16x1xi32>
    %c0_i32_4 = arith.constant 0 : i32
    %18 = vector.broadcast %c0_i32_4 : i32 to vector<16x1xi32>
    %19 = arith.cmpi eq, %17, %18 : vector<16x1xi32>
    %c1_i32_5 = arith.constant 1 : i32
    %20 = tpu.dynamic_rotate %0 by %c1_i32_5 dim 0 : vector<16x32xf32>, i32 -> vector<16x32xf32>
    %cst = arith.constant 0.000000e+00 : f32
    %21 = vector.shape_cast %19 : vector<16x1xi1> to vector<16x1xi1>
    %22 = vector.broadcast %21 : vector<16x1xi1> to vector<16x32xi1>
    %23 = vector.broadcast %cst : f32 to vector<16x32xf32>
    %24 = arith.select %22, %23, %20 : vector<16x32xi1>, vector<16x32xf32>
    %25 = tpu.concatenate %24, %0 in 1 : vector<16x32xf32>, vector<16x32xf32> -> vector<16x64xf32>
    %c0_6 = arith.constant 0 : index
    %c0_7 = arith.constant 0 : index
    %26 = vector.load %arg3[%c0_6, %c0_7] : memref<64x128xf32, #tpu.memory_space<vmem>>, vector<64x128xf32>
    %cst_8 = arith.constant dense<0.000000e+00> : vector<16x128xf32>
    %27 = tpu.matmul %25, %26, %cst_8 {dimension_numbers = #tpu.dot_dimension_numbers<[1], [0], [0], [1], [0, 0, 1, 1], [], []>} : vector<16x64xf32>, vector<64x128xf32>, vector<16x128xf32> -> vector<16x128xf32>
    %c0_9 = arith.constant 0 : index
    %c0_10 = arith.constant 0 : index
    %28 = vector.load %arg4[%c0_9, %c0_10] : memref<1x128xf32, #tpu.memory_space<vmem>>, vector<1x128xf32>
    %29 = vector.broadcast %28 : vector<1x128xf32> to vector<16x128xf32>
    %30 = arith.addf %27, %29 : vector<16x128xf32>
    %cst_11 = arith.constant 0.000000e+00 : f32
    %31 = vector.broadcast %cst_11 : f32 to vector<16x128xf32>
    %32 = arith.cmpf oge, %30, %31 : vector<16x128xf32>
    %cst_12 = arith.constant 2.000000e-01 : f32
    %33 = vector.broadcast %cst_12 : f32 to vector<16x128xf32>
    %34 = arith.mulf %33, %30 : vector<16x128xf32>
    %35 = arith.select %32, %30, %34 : vector<16x128xi1>, vector<16x128xf32>
    %c1_i32_13 = arith.constant 1 : i32
    %36 = tpu.dynamic_rotate %35 by %c1_i32_13 dim 0 : vector<16x128xf32>, i32 -> vector<16x128xf32>
    %cst_14 = arith.constant 0.000000e+00 : f32
    %37 = vector.shape_cast %19 : vector<16x1xi1> to vector<16x1xi1>
    %38 = vector.broadcast %37 : vector<16x1xi1> to vector<16x128xi1>
    %39 = vector.broadcast %cst_14 : f32 to vector<16x128xf32>
    %40 = arith.select %38, %39, %36 : vector<16x128xi1>, vector<16x128xf32>
    %41 = tpu.concatenate %40, %35 in 1 : vector<16x128xf32>, vector<16x128xf32> -> vector<16x256xf32>
    %c0_15 = arith.constant 0 : index
    %c0_16 = arith.constant 0 : index
    %42 = vector.load %arg5[%c0_15, %c0_16] : memref<256x128xf32, #tpu.memory_space<vmem>>, vector<256x128xf32>
    %cst_17 = arith.constant dense<0.000000e+00> : vector<16x128xf32>
    %43 = tpu.matmul %41, %42, %cst_17 {dimension_numbers = #tpu.dot_dimension_numbers<[1], [0], [0], [1], [0, 0, 1, 1], [], []>} : vector<16x256xf32>, vector<256x128xf32>, vector<16x128xf32> -> vector<16x128xf32>
    %c0_18 = arith.constant 0 : index
    %c0_19 = arith.constant 0 : index
    %44 = vector.load %arg6[%c0_18, %c0_19] : memref<1x128xf32, #tpu.memory_space<vmem>>, vector<1x128xf32>
    %45 = vector.broadcast %44 : vector<1x128xf32> to vector<16x128xf32>
    %46 = arith.addf %43, %45 : vector<16x128xf32>
    %47 = math.exp %46 : vector<16x128xf32>
    %c0_20 = arith.constant 0 : index
    %c0_21 = arith.constant 0 : index
    %48 = vector.load %arg2[%c0_20, %c0_21] : memref<16x128xf32, #tpu.memory_space<vmem>>, vector<16x128xf32>
    %49 = arith.mulf %47, %48 : vector<16x128xf32>
    %c0_22 = arith.constant 0 : index
    %c0_23 = arith.constant 0 : index
    %50 = vector.load %arg7[%c0_22, %c0_23] : memref<16x128xf32, #tpu.memory_space<vmem>>, vector<16x128xf32>
    tpu.vector_store %arg7[%c0_22, %c0_23], %49 {strides = array<i32>} : memref<16x128xf32, #tpu.memory_space<vmem>>, vector<16x128xf32>,
    return
  }
  func.func @transform_0(%arg0: i32) -> (i32, i32) {
    %c0_i32 = arith.constant 0 : i32
    %c0_i32_0 = arith.constant 0 : i32
    return %arg0, %c0_i32 : i32, i32
  }
  func.func @transform_1(%arg0: i32) -> (i32, i32) {
    %c0_i32 = arith.constant 0 : i32
    %c0_i32_0 = arith.constant 0 : i32
    return %arg0, %c0_i32 : i32, i32
  }
  func.func @transform_2(%arg0: i32) -> (i32, i32) {
    %c0_i32 = arith.constant 0 : i32
    %c0_i32_0 = arith.constant 0 : i32
    %c0_i32_1 = arith.constant 0 : i32
    return %c0_i32, %c0_i32_0 : i32, i32
  }
  func.func @transform_3(%arg0: i32) -> (i32, i32) {
    %c0_i32 = arith.constant 0 : i32
    %c0_i32_0 = arith.constant 0 : i32
    %c0_i32_1 = arith.constant 0 : i32
    return %c0_i32, %c0_i32_0 : i32, i32
  }
  func.func @transform_4(%arg0: i32) -> (i32, i32) {
    %c0_i32 = arith.constant 0 : i32
    %c0_i32_0 = arith.constant 0 : i32
    %c0_i32_1 = arith.constant 0 : i32
    return %c0_i32, %c0_i32_0 : i32, i32
  }
  func.func @transform_5(%arg0: i32) -> (i32, i32) {
    %c0_i32 = arith.constant 0 : i32
    %c0_i32_0 = arith.constant 0 : i32
    %c0_i32_1 = arith.constant 0 : i32
    return %c0_i32, %c0_i32_0 : i32, i32
  }
  func.func @transform_6(%arg0: i32) -> (i32, i32) {
    %c0_i32 = arith.constant 0 : i32
    %c0_i32_0 = arith.constant 0 : i32
    return %arg0, %c0_i32 : i32, i32
  }
}

</mosaic_0001>

<bundles_post_ra>
// kernel: tpu_custom_call.1
= control target key start
LH: loop header
LB: loop body
LE: loop exit
PB: predicated region body
PF: predicated region fallthrough
CT: control target
= control target key end

     0   :  { %11 = vsyncpa [#allocation3], 0  ;;  %s810_s0 = inlined_call_operand.hbm [shape: f32[16,32], index: 0, kind: input, shape index: {}]   ;;  %s811_s1 = inlined_call_operand.hbm [shape: f32[16,128], index: 1, kind: input, shape index: {}]   ;;  %s812_s2 = inlined_call_operand.hbm [shape: f32[64,128], index: 2, kind: input, shape index: {}]   ;;  %s813_s3 = inlined_call_operand.vmem [shape: f32[1,128], index: 3, kind: input, shape index: {}]   ;;  %s814_s4 = inlined_call_operand.hbm [shape: f32[256,128], index: 4, kind: input, shape index: {}]   ;;  %s815_s5 = inlined_call_operand.vmem [shape: f32[1,128], index: 5, kind: input, shape index: {}]   ;;  %s816_s6 = inlined_call_operand.hbm [shape: f32[16,128], index: 6, kind: output, shape index: {}]  }
   0x1   :  { %12 = vsyncpa [#allocation6], 0 }
   0x2   :  { %13 = vsyncpa [#allocation9], 0 }
   0x3   :  { %14 = vsyncpa [#allocation4], 0  ;;  %s637_s21 = smov [#allocation5]   ;;  %s638_s23 = smov [#allocation2]  }
   0x4   :  { %s32_s22 = sshll.u32 %s637_s21, 4  ;;  %s20_s24 = sshll.u32 %s638_s23, 4  ;;  %s33_s22 = int_to_ptr.vmem [resolvable:$true] %s32_s22  ;;  %s680_s24 = int_to_ptr.vmem [resolvable:$true] %s20_s24 }
   0x5   :  { %s519_s27 = scalar_lea.hbm %s811_s1, 256 }
   0x6   :  { %p520_p0 = scmp.ne.s32.totalorder %s811_s1, %s519_s27  ;;  %p523_p1 = scmp.lt.u32.totalorder %s519_s27, %s811_s1 }
   0x8   :  { %p525_p2 = pnand %p523_p1, %p520_p0 }
   0xa   :  { %528 = shalt.err (!%p525_p2)
}
   0xb   :  { %s529_s8 = scalar_lea.vmem %s33_s22, 256  ;;  %p534_p4 = scmp.lt.s32.totalorder %s33_s22, %s33_s22 }
   0xc   :  { %p530_p3 = scmp.ne.s32.totalorder %s33_s22, %s529_s8  ;;  %p535_p5 = scmp.lt.s32.totalorder %s529_s8, %s529_s8 }
   0xe   :  { %p536_p6 = por %p535_p5, %p534_p4 }
  0x10   :  { %p537_p7 = pnand %p536_p6, %p530_p3 }
  0x12   :  { %540 = shalt.err (!%p537_p7)
}
  0x13   :  { %s639_s9 = smov 128   ;;  %s640_s10 = smov 8  }
  0x14   :  { %38 = dma.hbm_to_vmem [thread:$0]  %s811_s1, 256, %s33_s22, [#allocation6], %s639_s9, %s639_s9, %s640_s10  }
  0x15   :  { %s541_s15 = scalar_lea.hbm %s810_s0, 256 }
  0x16   :  { %p542_p8 = scmp.ne.s32.totalorder %s810_s0, %s541_s15  ;;  %p545_p9 = scmp.lt.u32.totalorder %s541_s15, %s810_s0 }
  0x18   :  { %p547_p10 = pnand %p545_p9, %p542_p8 }
  0x1a   :  { %550 = shalt.err (!%p547_p10)
}
  0x1b   :  { %s551_s20 = scalar_lea.vmem %s680_s24, 256  ;;  %p556_p12 = scmp.lt.s32.totalorder %s680_s24, %s680_s24 }
  0x1c   :  { %p552_p11 = scmp.ne.s32.totalorder %s680_s24, %s551_s20  ;;  %p557_p13 = scmp.lt.s32.totalorder %s551_s20, %s551_s20 }
  0x1e   :  { %p558_p0 = por %p557_p13, %p556_p12 }
  0x20   :  { %p559_p1 = pnand %p558_p0, %p552_p11 }
  0x22   :  { %562 = shalt.err (!%p559_p1)
}
  0x23   :  { %26 = dma.hbm_to_vmem [thread:$0]  %s810_s0, 256, %s680_s24, [#allocation3], %s639_s9, %s639_s9, %s640_s10  }
  0x24   :  { %s641_s22 = smov [#allocation7]   ;;  %s642_s25 = smov [#allocation8]  }
  0x25   :  { %s44_s23 = sshll.u32 %s641_s22, 4  ;;  %s58_s26 = sshll.u32 %s642_s25, 4  ;;  %s45_s23 = int_to_ptr.vmem [resolvable:$true] %s44_s23  ;;  %s717_s26 = int_to_ptr.vmem [resolvable:$true] %s58_s26 }
  0x26   :  { %s563_s29 = scalar_lea.hbm %s812_s2, 1024 }
  0x27   :  { %p564_p2 = scmp.ne.s32.totalorder %s812_s2, %s563_s29  ;;  %p567_p3 = scmp.lt.u32.totalorder %s563_s29, %s812_s2 }
  0x29   :  { %p569_p4 = pnand %p567_p3, %p564_p2 }
  0x2b   :  { %572 = shalt.err (!%p569_p4)
}
  0x2c   :  { %s573_s0 = scalar_lea.vmem %s45_s23, 1024  ;;  %p578_p6 = scmp.lt.s32.totalorder %s45_s23, %s45_s23 }
  0x2d   :  { %p574_p5 = scmp.ne.s32.totalorder %s45_s23, %s573_s0  ;;  %p579_p7 = scmp.lt.s32.totalorder %s573_s0, %s573_s0 }
  0x2f   :  { %p580_p8 = por %p579_p7, %p578_p6 }
  0x31   :  { %p581_p9 = pnand %p580_p8, %p574_p5 }
  0x33   :  { %584 = shalt.err (!%p581_p9)
}
  0x34   :  { %50 = dma.hbm_to_vmem [thread:$0]  %s812_s2, 1024, %s45_s23, [#allocation6], %s639_s9, %s639_s9, %s640_s10  }
  0x35   :  { %s585_s15 = scalar_lea.hbm %s814_s4, 4096 }
  0x36   :  { %p586_p10 = scmp.ne.s32.totalorder %s814_s4, %s585_s15  ;;  %p589_p11 = scmp.lt.u32.totalorder %s585_s15, %s814_s4 }
  0x38   :  { %p591_p12 = pnand %p589_p11, %p586_p10 }
  0x3a   :  { %594 = shalt.err (!%p591_p12)
}
  0x3b   :  { %s595_s20 = scalar_lea.vmem %s717_s26, 4096  ;;  %p600_p0 = scmp.lt.s32.totalorder %s717_s26, %s717_s26 }
  0x3c   :  { %p596_p13 = scmp.ne.s32.totalorder %s717_s26, %s595_s20  ;;  %p601_p1 = scmp.lt.s32.totalorder %s595_s20, %s595_s20 }
  0x3e   :  { %p602_p2 = por %p601_p1, %p600_p0 }
  0x40   :  { %p603_p3 = pnand %p602_p2, %p596_p13 }
  0x42   :  { %606 = shalt.err (!%p603_p3)
}
  0x43   :  { %64 = dma.hbm_to_vmem [thread:$0]  %s814_s4, 4096, %s717_s26, [#allocation9], %s639_s9, %s639_s9, %s640_s10  }
  0x44   :  { %629 = dma.done.wait [#allocation3], 256  }
  0x45   :  { %630 = vsyncadd [#allocation3], 4294967040 }
  0x46   :  { %631 = dma.done.wait [#allocation6], 1280  }
  0x47   :  { %632 = vsyncadd [#allocation6], 4294966016 }
  0x48   :  { %633 = dma.done.wait [#allocation9], 4096  }
  0x49   :  { %634 = vsyncadd [#allocation9], 4294963200  ;;  %v81_v0 = vlaneseq  ;;  %v79_v2 = vld [vmem:[#allocation2] sm:$0xff]  ;;  %v80_v3 = vld [vmem:[#allocation2 + $0x8] sm:$0xff]  ;;  %s643_s21 = smov 32   ;;  %vm129_vm2 = vcmask 261120  }
  0x4a   :  { %v132_v4 = vld [vmem:[#allocation7] sm:$0xff]  ;;  %123 = vrot.lane.b32.xlu0 %v79_v2, %s643_s21  ;;  %v110_v5 = vrot.slane %v79_v2, 7  ;;  %v111_v6 = vrot.slane %v80_v3, 7  ;;  %v133_v7 = vld [vmem:[#allocation7 + $0x8] sm:$0xff]  ;;  %v134_v8 = vld [vmem:[#allocation7 + $0x10] sm:$0xff]  ;;  %vm147_vm3 = vcmask 523264  }
  0x4b   :  { %v754_v1 = vshrl.u32 %v81_v0, 7  ;;  %v135_v9 = vld [vmem:[#allocation7 + $0x18] sm:$0xff]  ;;  %v459_v10 = vpack.c.bf16 %v133_v7, %v132_v4  ;;  %v136_v12 = vld [vmem:[#allocation7 + $0x20] sm:$0xff]  ;;  %v137_v13 = vld [vmem:[#allocation7 + $0x28] sm:$0xff]  ;;  %s644_s25 = smov [#allocation10]  }
  0x4c   :  { %v463_v11 = vpack.c.bf16 %v135_v9, %v134_v8  ;;  %v257_v16 = vld [vmem:[#allocation8 + $0x80] sm:$0xff]  ;;  %v258_v17 = vld [vmem:[#allocation8 + $0x88] sm:$0xff]  ;;  %v259_v21 = vld [vmem:[#allocation8 + $0x90] sm:$0xff]  ;;  %v467_v26 = vpack.c.bf16 %v137_v13, %v136_v12  ;;  %s370_s26 = sshll.u32 %s644_s25, 4  ;;  %s371_s26 = int_to_ptr.vmem [resolvable:$true] %s370_s26 }
  0x4d   :  { %vm112_vm0 = vcmp.lt.s32.totalorder %v754_v1, 1  ;;  %460 = vmatprep.subr.bf16.mxu0 %v459_v10  ;;  %v475_v18 = vpack.c.bf16 %v258_v17, %v257_v16  ;;  %v241_v19 = vld [vmem:[#allocation8] sm:$0xff]  ;;  %v242_v20 = vld [vmem:[#allocation8 + $0x8] sm:$0xff]  ;;  %v260_v23 = vld [vmem:[#allocation8 + $0x98] sm:$0xff]  ;;  %v88_v56 = vand.u32 7, %v754_v1  ;;  %v83_v57 = vadd.s32 8, %v754_v1  ;;  %p612_p5 = scmp.lt.s32.totalorder %s371_s26, %s371_s26 }
  0x4e   :  { %v759_v14 = vsel %vm112_vm0, %v111_v6, %v110_v5  ;;  %v763_v15 = vsel %vm112_vm0, %v110_v5, %v111_v6  ;;  %125 = vrot.lane.b32.xlu0 %v80_v3, %s643_s21  ;;  %462 = vmatpush3.bf16.msra.mxu0 %v459_v10  ;;  %v477_v22 = vpack.c.bf16 %v242_v20, %v241_v19  ;;  %v243_v24 = vld [vmem:[#allocation8 + $0x10] sm:$0xff]  ;;  %v244_v25 = vld [vmem:[#allocation8 + $0x18] sm:$0xff]  ;;  %v261_v28 = vld [vmem:[#allocation8 + $0xa0] sm:$0xff] }
  0x4f   :  { %464 = vmatprep.subr.bf16.mxu0 %v463_v11  ;;  %476 = vmatprep.subr.bf16.mxu1 %v475_v18  ;;  %v479_v27 = vpack.c.bf16 %v260_v23, %v259_v21  ;;  %v262_v29 = vld [vmem:[#allocation8 + $0xa8] sm:$0xff]  ;;  %v138_v30 = vld [vmem:[#allocation7 + $0x30] sm:$0xff]  ;;  %v139_v31 = vld [vmem:[#allocation7 + $0x38] sm:$0xff]  ;;  %v481_v32 = vpack.c.bf16 %v244_v25, %v243_v24  ;;  %vm767_vm1 = vcmp.eq.s32.totalorder %v88_v56, 0  ;;  %v95_v59 = vand.u32 7, %v83_v57 }
  0x50   :  { %478 = vmatpush3.bf16.msra.mxu1 %v477_v22  ;;  %v483_v33 = vpack.c.bf16 %v262_v29, %v261_v28  ;;  %v245_v34 = vld [vmem:[#allocation8 + $0x20] sm:$0xff]  ;;  %v246_v35 = vld [vmem:[#allocation8 + $0x28] sm:$0xff]  ;;  %v263_v36 = vld [vmem:[#allocation8 + $0xb0] sm:$0xff]  ;;  %v471_v38 = vpack.c.bf16 %v139_v31, %v138_v30  ;;  %v119_v60 = vsel %vm767_vm1, 0.0, %v759_v14 }
  0x51   :  { %480 = vmatprep.subr.bf16.mxu1 %v479_v27  ;;  %v264_v37 = vld [vmem:[#allocation8 + $0xb8] sm:$0xff]  ;;  %v485_v39 = vpack.c.bf16 %v246_v35, %v245_v34  ;;  %v247_v41 = vld [vmem:[#allocation8 + $0x30] sm:$0xff]  ;;  %v265_v43 = vld [vmem:[#allocation8 + $0xc0] sm:$0xff]  ;;  %vm774_vm4 = vcmp.eq.s32.totalorder %v95_v59, 0 }
  0x52   :  { %466 = vmatpush3.bf16.msra.mxu0 %v463_v11  ;;  %v487_v40 = vpack.c.bf16 %v264_v37, %v263_v36  ;;  %v248_v42 = vld [vmem:[#allocation8 + $0x38] sm:$0xff]  ;;  %v266_v44 = vld [vmem:[#allocation8 + $0xc8] sm:$0xff]  ;;  %v249_v47 = vld [vmem:[#allocation8 + $0x40] sm:$0xff]  ;;  %v120_v0 = vsel %vm774_vm4, 0.0, %v763_v15 }
  0x53   :  { %468 = vmatprep.subr.bf16.mxu0 %v467_v26  ;;  %v489_v45 = vpack.c.bf16 %v248_v42, %v247_v41  ;;  %v491_v46 = vpack.c.bf16 %v266_v44, %v265_v43  ;;  %v250_v48 = vld [vmem:[#allocation8 + $0x48] sm:$0xff]  ;;  %v267_v49 = vld [vmem:[#allocation8 + $0xd0] sm:$0xff]  ;;  %v268_v50 = vld [vmem:[#allocation8 + $0xd8] sm:$0xff] }
  0x54   :  { %482 = vmatpush3.bf16.msra.mxu1 %v481_v32  ;;  %v493_v51 = vpack.c.bf16 %v250_v48, %v249_v47  ;;  %v495_v52 = vpack.c.bf16 %v268_v50, %v267_v49  ;;  %v251_v53 = vld [vmem:[#allocation8 + $0x50] sm:$0xff]  ;;  %v252_v54 = vld [vmem:[#allocation8 + $0x58] sm:$0xff]  ;;  %v269_v4 = vld [vmem:[#allocation8 + $0xe0] sm:$0xff] }
  0x55   :  { %484 = vmatprep.subr.bf16.mxu1 %v483_v33  ;;  %v497_v55 = vpack.c.bf16 %v252_v54, %v251_v53  ;;  %v270_v5 = vld [vmem:[#allocation8 + $0xe8] sm:$0xff]  ;;  %v253_v7 = vld [vmem:[#allocation8 + $0x60] sm:$0xff]  ;;  %v271_v10 = vld [vmem:[#allocation8 + $0xf0] sm:$0xff] }
  0x56   :  { %470 = vmatpush3.bf16.msra.mxu0 %v467_v26  ;;  %v499_v6 = vpack.c.bf16 %v270_v5, %v269_v4  ;;  %v254_v8 = vld [vmem:[#allocation8 + $0x68] sm:$0xff]  ;;  %v272_v11 = vld [vmem:[#allocation8 + $0xf8] sm:$0xff]  ;;  %v255_v13 = vld [vmem:[#allocation8 + $0x70] sm:$0xff] }
  0x57   :  { %472 = vmatprep.subr.bf16.mxu0 %v471_v38  ;;  %v501_v9 = vpack.c.bf16 %v254_v8, %v253_v7  ;;  %v503_v12 = vpack.c.bf16 %v272_v11, %v271_v10  ;;  %v256_v14 = vld [vmem:[#allocation8 + $0x78] sm:$0xff]  ;;  %v384_v15 = vld [vmem:[%s813_s3] ss:$0 sm:$0xff]  ;;  %vm388_vm7 = vmneg %vm767_vm1 }
  0x58   :  { %486 = vmatpush3.bf16.msra.mxu1 %v485_v39  ;;  %v505_v16 = vpack.c.bf16 %v256_v14, %v255_v13  ;;  %vm390_vm8 = vmneg %vm774_vm4  ;;  %v387_v30 = vld [vmem:[%s815_s5] ss:$0 sm:$0xff]  ;;  %v359_v39 = vld [vmem:[#allocation5] sm:$0xff]  ;;  %s607_s5 = scalar_lea.vmem %s371_s26, 256 }
  0x59   :  { %488 = vmatprep.subr.bf16.mxu1 %v487_v40  ;;  %v360_v42 = vld [vmem:[#allocation5 + $0x8] sm:$0xff]  ;;  %p608_p4 = scmp.ne.s32.totalorder %s371_s26, %s607_s5  ;;  %p613_p6 = scmp.lt.s32.totalorder %s607_s5, %s607_s5 }
  0x5a   :  { %474 = vmatpush3.bf16.msra.mxu0 %v471_v38 }
  0x5b   :  { %p614_p7 = por %p613_p6, %p612_p5 }
  0x5c   :  { %490 = vmatpush3.bf16.msra.mxu1 %v489_v45 }
  0x5d   :  { %492 = vmatprep.subr.bf16.mxu1 %v491_v46  ;;  %p615_p8 = pnand %p614_p7, %p608_p4 }
  0x60   :  { %494 = vmatpush3.bf16.msra.mxu1 %v493_v51 }
  0x61   :  { %496 = vmatprep.subr.bf16.mxu1 %v495_v52 }
  0x64   :  { %498 = vmatpush3.bf16.msra.mxu1 %v497_v55 }
  0x65   :  { %500 = vmatprep.subr.bf16.mxu1 %v499_v6 }
  0x68   :  { %502 = vmatpush3.bf16.msra.mxu1 %v501_v9 }
  0x69   :  { %504 = vmatprep.subr.bf16.mxu1 %v503_v12 }
  0x6c   :  { %506 = vmatpush3.bf16.msra.mxu1 %v505_v16 }
  0xbc   :  { %v124_v62 = vpop.permute.xlu0 %123 }
  0xbd   :  { %v130_v63 = vsel %vm129_vm2, %v119_v60, %v124_v62 }
  0xbe   :  { %456 = vmatprep.mubr.msk.f32.mxu0 %vm147_vm3, %v130_v63 }
  0xc0   :  { %v126_v2 = vpop.permute.xlu0 %125 }
  0xc1   :  { %v131_v3 = vsel %vm129_vm2, %v120_v0, %v126_v2 }
  0xc2   :  { %457 = vmatmul.mubr.msk.f32.vlgmr.msra.gmra.mrb[0].mxu0 %vm147_vm3, %v131_v3 }
 0x195   :  { %v458_v17 = vpop.f32.mrb[0].mxu0 }
 0x196   :  { %v226_v18 = vadd.f32 %v458_v17, %v384_v15  ;;  %v220_v19 = vpop.f32.mrb[1].mxu0 }
 0x197   :  { %v221_v20 = vadd.f32 %v384_v15, %v220_v19 }
 0x198   :  { %vm230_vm5 = vcmp.ge.f32.partialorder %v226_v18, 0.0  ;;  %v232_v21 = vmul.f32 0.2, %v226_v18 }
 0x199   :  { %vm229_vm6 = vcmp.ge.f32.partialorder %v221_v20, 0.0  ;;  %v231_v22 = vmul.f32 0.2, %v221_v20 }
 0x19a   :  { %v234_v23 = vsel %vm230_vm5, %v226_v18, %v232_v21 }
 0x19b   :  { %v236_v24 = vrot.slane %v234_v23, 7  ;;  %v233_v25 = vsel %vm229_vm6, %v221_v20, %v231_v22 }
 0x19c   :  { %v235_v26 = vrot.slane %v233_v25, 7  ;;  %344 = vmatprep.mubr.f32.mxu1 %v233_v25 }
 0x19e   :  { %v238_v27 = vsel %vm112_vm0, %v236_v24, %v235_v26  ;;  %v237_v28 = vsel %vm112_vm0, %v235_v26, %v236_v24 }
 0x19f   :  { %389 = vmatmul.mubr.msk.f32.vlgmr.msra.gmra.mrb[0].mxu1 %vm388_vm7, %v238_v27 }
 0x1a0   :  { %349 = vmatprep.mubr.f32.mxu1 %v234_v23 }
 0x1a3   :  { %391 = vmatmul.mubr.msk.f32.gmra.mrb[2].mxu1 %vm390_vm8, %v237_v28 }
 0x272   :  { %v434_v29 = vpop.f32.mrb[0].mxu1 }
 0x273   :  { %v435_v31 = vpop.f32.mrb[1].mxu1 }
 0x274   :  { %v436_v32 = vadd.f32 %v435_v31, %v434_v29 }
 0x276   :  { %v347_v33 = vadd.f32 %v436_v32, %v387_v30  ;;  %v437_v34 = vpop.f32.mrb[2].mxu1 }
 0x277   :  { %v438_v35 = vpop.f32.mrb[3].mxu1 }
 0x278   :  { %v355_v36 = vmul.f32 1.442695, %v347_v33  ;;  %v439_v37 = vadd.f32 %v438_v35, %v437_v34 }
 0x27a   :  { %515 = vpow2.f32 %v355_v36  ;;  %v352_v1 = vadd.f32 %v439_v37, %v387_v30 }
 0x27c   :  { %v357_v38 = vmul.f32 1.442695, %v352_v1 }
 0x27e   :  { %517 = vpow2.f32 %v357_v38 }
 0x284   :  { %v516_v40 = vpop.eup %515 }
 0x285   :  { %v361_v41 = vmul.f32 %v516_v40, %v359_v39 }
 0x287   :  { %363 = vst [vmem:[#allocation10] sm:$0xff] %v361_v41 }
 0x288   :  { %v518_v43 = vpop.eup %517 }
 0x289   :  { %v362_v44 = vmul.f32 %v518_v43, %v360_v42 }
 0x28b   :  { %364 = vst [vmem:[#allocation10 + $0x8] sm:$0xff] %v362_v44 }
 0x28c   :  { %618 = shalt.err (!%p615_p8)
}
 0x28d   :  { %s619_s29 = scalar_lea.hbm %s816_s6, 256 }
 0x28e   :  { %p620_p9 = scmp.ne.s32.totalorder %s816_s6, %s619_s29  ;;  %p623_p10 = scmp.lt.u32.totalorder %s619_s29, %s816_s6 }
 0x290   :  { %p625_p11 = pnand %p623_p10, %p620_p9 }
 0x292   :  { %628 = shalt.err (!%p625_p11)
}
 0x293   :  { %376 = dma.vmem_to_hbm [thread:$0]  %s371_s26, 256, %s816_s6, [#allocation4], %s639_s9, %s639_s9, %s640_s10  }
 0x294   :  { %635 = dma.done.wait [#allocation4], 256  }
 0x295   :  { %636 = vsyncadd [#allocation4], 4294967040 }
 0x296   :  { %380 = vsyncpa [#allocation3], 1 }
 0x297   :  { %381 = vsyncpa [#allocation6], 1 }
 0x298   :  { %382 = vsyncpa [#allocation9], 1 }
 0x299   :  { %383 = vsyncpa [#allocation4], 1 }

</bundles_post_ra>
